<compile_context>
chip_gen: v6e
topology: v6e:2x2x1
jax: 0.10.0
libtpu: 0.0.40
codegen_flags: <defaults>
</compile_context>

<pallas_src>
import jax
import jax.numpy as jnp
from jax.experimental import pallas as pl
from jax.experimental.pallas import tpu as pltpu


def _mlp_kernel(x_ref, w1_ref, b1_ref, w2_ref, b2_ref, w3_ref, b3_ref, o_ref):
    # x_ref: (bm, 26)   w1: (20, 26)  b1: (20, 1)
    #                   w2: (10, 20)  b2: (10, 1)
    #                   w3: ( 4, 10)  b3: ( 4, 1)
    # o_ref: (4, bm)  -- transposed output, batch on the lane axis.
    x = x_ref[...]

    # h1^T = W1 @ x^T : contract dim 1 of both operands, i.e. x enters as the
    # transposed RHS of the matmul (no explicit transpose materialized).
    h1 = jax.lax.dot_general(
        w1_ref[...], x, (((1,), (1,)), ((), ())),
        preferred_element_type=jnp.float32) + b1_ref[...]
    h1 = jnp.maximum(h1, 0.0)                                    # (20, bm)

    h2 = jnp.dot(w2_ref[...], h1, preferred_element_type=jnp.float32) + b2_ref[...]
    h2 = jnp.maximum(h2, 0.0)                                    # (10, bm)

    out = jnp.dot(w3_ref[...], h2, preferred_element_type=jnp.float32) + b3_ref[...]
    o_ref[...] = out.astype(o_ref.dtype)                         # (4, bm) lane-dense store


def lang_mc_forward(x, params, *, bm=512):
    """LangMCModel forward via Pallas.

    x: (B, 26) float32.  params = (w1, b1, w2, b2, w3, b3) with PyTorch-layout
    weights (out, in) and column biases (out, 1).  Returns (B, 4) float32.
    """
    w1, b1, w2, b2, w3, b3 = params
    B, f_in = x.shape
    assert f_in == 26, "LangMCModel expects 26 input features"

    if B <= bm:
        # Grid-less path: the whole problem is a few KiB -> a single DMA plus
        # three MXU pushes, no per-step pipeline bookkeeping.
        out_t = pl.pallas_call(
            _mlp_kernel,
            out_shape=jax.ShapeDtypeStruct((4, B), jnp.float32),
        )(x, w1, b1, w2, b2, w3, b3)
        return out_t.T

    # Tiled path: large batch tiles; (4, bm) output blocks are lane-dense.
    assert bm % 128 == 0, "bm must be a multiple of 128 for lane-dense stores"
    n_tiles = pl.cdiv(B, bm)              # >= 2 here, since B > bm
    b_pad = n_tiles * bm
    if b_pad != B:
        x = jnp.pad(x, ((0, b_pad - B), (0, 0)))

    def _const(shape):
        # Full-array block at a constant block index: DMA'd once, then reused.
        return pl.BlockSpec(shape, lambda i: (0,) * len(shape))

    out_t = pl.pallas_call(
        _mlp_kernel,
        out_shape=jax.ShapeDtypeStruct((4, b_pad), jnp.float32),
        grid=(n_tiles,),
        in_specs=[
            pl.BlockSpec((bm, 26), lambda i: (i, 0)),   # x batch tile
            _const((20, 26)), _const((20, 1)),
            _const((10, 20)), _const((10, 1)),
            _const((4, 10)), _const((4, 1)),
        ],
        out_specs=pl.BlockSpec((4, bm), lambda i: (0, i)),
        compiler_params=pltpu.CompilerParams(
            dimension_semantics=("parallel",)),
    )(x, w1, b1, w2, b2, w3, b3)
    # NOTE: on v6e/v7x, casting x (and weights) to bf16 would halve HBM bytes of
    # the dominant x stream; kept f32 to match the PyTorch module's numerics.
    return out_t[:, :B].T


def init_params(key):
    """PyTorch nn.Linear-style init: uniform(+/- 1/sqrt(fan_in)).
    Weights stored (out_features, in_features); biases stored (out_features, 1)."""
    dims = [(26, 20), (20, 10), (10, 4)]
    params = []
    for fan_in, fan_out in dims:
        key, kw, kb = jax.random.split(key, 3)
        bound = 1.0 / jnp.sqrt(fan_in)
        w = jax.random.uniform(kw, (fan_out, fan_in), jnp.float32, -bound, bound)
        b = jax.random.uniform(kb, (fan_out, 1), jnp.float32, -bound, bound)
        params.extend([w, b])
    return tuple(params)


def reference_forward(x, params):
    w1, b1, w2, b2, w3, b3 = params
    h1 = jnp.maximum(x @ w1.T + b1.T, 0.0)
    h2 = jnp.maximum(h1 @ w2.T + b2.T, 0.0)
    return h2 @ w3.T + b3.T


if __name__ == "__main__":
    key = jax.random.PRNGKey(0)
    key_x, key_x2, key_p = jax.random.split(key, 3)

    params = init_params(key_p)

    # Small batch -> grid-less single-invocation path.
    B_small = 16
    x_small = jax.random.uniform(key_x, (B_small, 26), jnp.float32)
    out_small = jax.block_until_ready(lang_mc_forward(x_small, params))
    ref_small = reference_forward(x_small, params)
    assert out_small.shape == (B_small, 4)
    assert jnp.allclose(out_small, ref_small, atol=1e-5, rtol=1e-4), "small-batch mismatch"

    # Modest batch -> tiled path (padding + >=2 parallel grid steps).
    B_big = 300
    x_big = jax.random.uniform(key_x2, (B_big, 26), jnp.float32)
    out_big = jax.block_until_ready(lang_mc_forward(x_big, params, bm=128))
    ref_big = reference_forward(x_big, params)
    assert out_big.shape == (B_big, 4)
    assert jnp.allclose(out_big, ref_big, atol=1e-5, rtol=1e-4), "tiled-path mismatch"

    print("KERNEL_OK")
</pallas_src>

<mosaic_0001>
module attributes {stable_mosaic.version = 11 : i64} {
  func.func @_mlp_kernel(%arg0: memref<16x26xf32, #tpu.memory_space<vmem>>, %arg1: memref<20x26xf32, #tpu.memory_space<vmem>>, %arg2: memref<20x1xf32, #tpu.memory_space<vmem>>, %arg3: memref<10x20xf32, #tpu.memory_space<vmem>>, %arg4: memref<10x1xf32, #tpu.memory_space<vmem>>, %arg5: memref<4x10xf32, #tpu.memory_space<vmem>>, %arg6: memref<4x1xf32, #tpu.memory_space<vmem>>, %arg7: memref<4x16xf32, #tpu.memory_space<vmem>>) attributes {dimension_semantics = [], scalar_prefetch = 0 : i64, scratch_operands = 0 : i64, tpu.core_type = #tpu.core_type<tc>} {
    %c0 = arith.constant 0 : index
    %c0_0 = arith.constant 0 : index
    %0 = vector.load %arg0[%c0, %c0_0] : memref<16x26xf32, #tpu.memory_space<vmem>>, vector<16x26xf32>
    %c0_1 = arith.constant 0 : index
    %c0_2 = arith.constant 0 : index
    %1 = vector.load %arg1[%c0_1, %c0_2] : memref<20x26xf32, #tpu.memory_space<vmem>>, vector<20x26xf32>
    %cst = arith.constant dense<0.000000e+00> : vector<20x16xf32>
    %2 = tpu.matmul %1, %0, %cst {dimension_numbers = #tpu.dot_dimension_numbers<[1], [1], [0], [0], [0, 0, 1, 0], [], []>} : vector<20x26xf32>, vector<16x26xf32>, vector<20x16xf32> -> vector<20x16xf32>
    %c0_3 = arith.constant 0 : index
    %c0_4 = arith.constant 0 : index
    %3 = vector.load %arg2[%c0_3, %c0_4] : memref<20x1xf32, #tpu.memory_space<vmem>>, vector<20x1xf32>
    %4 = vector.broadcast %3 : vector<20x1xf32> to vector<20x16xf32>
    %5 = arith.addf %2, %4 : vector<20x16xf32>
    %cst_5 = arith.constant 0.000000e+00 : f32
    %6 = vector.broadcast %cst_5 : f32 to vector<20x16xf32>
    %7 = arith.maximumf %5, %6 : vector<20x16xf32>
    %c0_6 = arith.constant 0 : index
    %c0_7 = arith.constant 0 : index
    %8 = vector.load %arg3[%c0_6, %c0_7] : memref<10x20xf32, #tpu.memory_space<vmem>>, vector<10x20xf32>
    %cst_8 = arith.constant dense<0.000000e+00> : vector<10x16xf32>
    %9 = tpu.matmul %8, %7, %cst_8 {dimension_numbers = #tpu.dot_dimension_numbers<[1], [0], [0], [1], [0, 0, 1, 1], [], []>} : vector<10x20xf32>, vector<20x16xf32>, vector<10x16xf32> -> vector<10x16xf32>
    %c0_9 = arith.constant 0 : index
    %c0_10 = arith.constant 0 : index
    %10 = vector.load %arg4[%c0_9, %c0_10] : memref<10x1xf32, #tpu.memory_space<vmem>>, vector<10x1xf32>
    %11 = vector.broadcast %10 : vector<10x1xf32> to vector<10x16xf32>
    %12 = arith.addf %9, %11 : vector<10x16xf32>
    %cst_11 = arith.constant 0.000000e+00 : f32
    %13 = vector.broadcast %cst_11 : f32 to vector<10x16xf32>
    %14 = arith.maximumf %12, %13 : vector<10x16xf32>
    %c0_12 = arith.constant 0 : index
    %c0_13 = arith.constant 0 : index
    %15 = vector.load %arg5[%c0_12, %c0_13] : memref<4x10xf32, #tpu.memory_space<vmem>>, vector<4x10xf32>
    %cst_14 = arith.constant dense<0.000000e+00> : vector<4x16xf32>
    %16 = tpu.matmul %15, %14, %cst_14 {dimension_numbers = #tpu.dot_dimension_numbers<[1], [0], [0], [1], [0, 0, 1, 1], [], []>} : vector<4x10xf32>, vector<10x16xf32>, vector<4x16xf32> -> vector<4x16xf32>
    %c0_15 = arith.constant 0 : index
    %c0_16 = arith.constant 0 : index
    %17 = vector.load %arg6[%c0_15, %c0_16] : memref<4x1xf32, #tpu.memory_space<vmem>>, vector<4x1xf32>
    %18 = vector.broadcast %17 : vector<4x1xf32> to vector<4x16xf32>
    %19 = arith.addf %16, %18 : vector<4x16xf32>
    %c0_17 = arith.constant 0 : index
    %c0_18 = arith.constant 0 : index
    %20 = vector.load %arg7[%c0_17, %c0_18] : memref<4x16xf32, #tpu.memory_space<vmem>>, vector<4x16xf32>
    tpu.vector_store %arg7[%c0_17, %c0_18], %19 {strides = array<i32>} : memref<4x16xf32, #tpu.memory_space<vmem>>, vector<4x16xf32>,
    return
  }
}

</mosaic_0001>

<bundles_post_ra>
// kernel: tpu_custom_call.1
= control target key start
LH: loop header
LB: loop body
LE: loop exit
PB: predicated region body
PF: predicated region fallthrough
CT: control target
= control target key end

     0   :  { %12 = vsyncpa [#allocation3], 0  ;;  %s580_s0 = inlined_call_operand.vmem [shape: f32[16,26], index: 0, kind: input, shape index: {}]   ;;  %s581_s1 = inlined_call_operand.vmem [shape: f32[20,26], index: 1, kind: input, shape index: {}]   ;;  %s582_s2 = inlined_call_operand.vmem [shape: f32[20,1], index: 2, kind: input, shape index: {}]   ;;  %s583_s3 = inlined_call_operand.hbm [shape: f32[10,20], index: 3, kind: input, shape index: {}]   ;;  %s584_s4 = inlined_call_operand.vmem [shape: f32[10,1], index: 4, kind: input, shape index: {}]   ;;  %s585_s5 = inlined_call_operand.vmem [shape: f32[4,10], index: 5, kind: input, shape index: {}]   ;;  %s586_s6 = inlined_call_operand.vmem [shape: f32[4,1], index: 6, kind: input, shape index: {}]   ;;  %s587_s7 = inlined_call_operand.hbm [shape: f32[4,16], index: 7, kind: output, shape index: {}]  }
   0x1   :  { %13 = vsyncpa [#allocation4], 0  ;;  %s472_s24 = smov [#allocation2]  }
   0x2   :  { %s25_s25 = sshll.u32 %s472_s24, 4  ;;  %s26_s25 = int_to_ptr.vmem [resolvable:$true] %s25_s25 }
   0x3   :  { %s436_s26 = scalar_lea.vmem %s26_s25, 256  ;;  %p441_p1 = scmp.lt.s32.totalorder %s26_s25, %s26_s25 }
   0x4   :  { %p437_p0 = scmp.ne.s32.totalorder %s26_s25, %s436_s26  ;;  %p442_p2 = scmp.lt.s32.totalorder %s436_s26, %s436_s26 }
   0x6   :  { %p443_p3 = por %p442_p2, %p441_p1 }
   0x8   :  { %p444_p4 = pnand %p443_p3, %p437_p0 }
   0xa   :  { %447 = shalt.err (!%p444_p4)
}
   0xb   :  { %s473_s27 = smov 128   ;;  %s474_s28 = smov 8  }
   0xc   :  { %31 = dma.hbm_to_vmem [thread:$0]  %s583_s3, 256, %s26_s25, [#allocation3], %s473_s27, %s473_s27, %s474_s28  }
   0xd   :  { %468 = dma.done.wait [#allocation3], 256  }
   0xe   :  { %469 = vsyncadd [#allocation3], 4294967040  ;;  %v475_v0 = vmov 0.0   ;;  %vm476_vm0 = vmmov 0   ;;  %v477_v1 = vmov 0   ;;  %vm64_vm1 = vcmask 211968  }
   0xf   :  { %390 = vmatprep.subr.mxu0 %v475_v0  ;;  %394 = vmatprep.mubr.msk.f32.mxu0 %vm476_vm0, %v475_v0  ;;  %v42_v2 = vld [vmem:[%s580_s0 + $0x8] sm:$0xff]  ;;  %v48_v3 = vld [vmem:[%s582_s2 + $0x10] sm:$0xf]  ;;  %v41_v4 = vld [vmem:[%s580_s0] sm:$0xff]  ;;  %vm177_vm2 = vcmask 162816   ;;  %vm184_vm3 = vcmask 1043456  }
  0x10   :  { %426 = vset.pattern.permute.xlu0 %v477_v1  ;;  %427 = vset.pattern.permute.xlu1 %v477_v1  ;;  %v46_v5 = vld [vmem:[%s582_s2] sm:$0xff]  ;;  %v47_v6 = vld [vmem:[%s582_s2 + $0x8] sm:$0xff]  ;;  %v45_v12 = vld [vmem:[%s581_s1 + $0x10] sm:$0xf]  ;;  %vm276_vm4 = vcmask 1041408   ;;  %vm272_vm5 = vcmask 80896  }
  0x11   :  { %391 = vmatpush3.xpose.msk.msra.mxu0 %vm64_vm1, %v42_v2  ;;  %61 = vperm.xlu0 %426, %v48_v3   ;;  %v166_v7 = vld [vmem:[%s584_s4 + $0x8] sm:$0x3]  ;;  %v43_v8 = vld [vmem:[%s581_s1] sm:$0xff]  ;;  %s478_s26 = smov [#allocation5]   ;;  %vm350_vm6 = vcmask 125952  }
  0x12   :  { %392 = vmatprep.subr.mxu0 %v475_v0  ;;  %51 = vperm.xlu1 %427, %v46_v5   ;;  %v165_v9 = vld [vmem:[%s584_s4] sm:$0xff]  ;;  %v44_v11 = vld [vmem:[%s581_s1 + $0x8] sm:$0xff]  ;;  %s358_s27 = sshll.u32 %s478_s26, 4  ;;  %s359_s27 = int_to_ptr.vmem [resolvable:$true] %s358_s27 }
  0x13   :  { %v266_v10 = vld [vmem:[%s586_s6] sm:$0xf]  ;;  %v164_v29 = vld [vmem:[#allocation2 + $0x8] sm:$0x3]  ;;  %s448_s28 = scalar_lea.vmem %s359_s27, 64  ;;  %p453_p6 = scmp.lt.s32.totalorder %s359_s27, %s359_s27 }
  0x14   :  { %v163_v13 = vld [vmem:[#allocation2] sm:$0xff]  ;;  %p449_p5 = scmp.ne.s32.totalorder %s359_s27, %s448_s28  ;;  %p454_p7 = scmp.lt.s32.totalorder %s448_s28, %s448_s28 }
  0x15   :  { %393 = vmatpush3.xpose.msk.msra.mxu0 %vm64_vm1, %v41_v4  ;;  %56 = vperm.xlu0 %426, %v47_v6   ;;  %v265_v38 = vld [vmem:[%s585_s5] sm:$0xf] }
  0x16   :  { %174 = vperm.xlu1 %427, %v166_v7   ;;  %409 = vmatprep.mubr.msk.f32.mxu1 %vm177_vm2, %v163_v13  ;;  %p455_p8 = por %p454_p7, %p453_p6 }
  0x18   :  { %395 = vmatmul.mubr.msk.f32.vlgmr.msra.gmra.mxu0 %vm64_vm1, %v43_v8  ;;  %p456_p9 = pnand %p455_p8, %p449_p5 }
  0x19   :  { %397 = vmatprep.mubr.msk.f32.mxu0 %vm476_vm0, %v475_v0  ;;  %169 = vperm.xlu0 %426, %v165_v9  }
  0x1a   :  { %269 = vperm.xlu1 %427, %v266_v10  }
  0x1c   :  { %398 = vmatmul.mubr.msk.f32.gmra.mxu0 %vm64_vm1, %v44_v11 }
  0x1d   :  { %400 = vmatprep.mubr.msk.f32.mxu0 %vm476_vm0, %v475_v0 }
  0x20   :  { %401 = vmatmul.mubr.msk.f32.gmra.mxu0 %vm64_vm1, %v45_v12 }
  0x8c   :  { %v62_v15 = vpop.permute.xlu0 %61 }
  0x8d   :  { %v52_v19 = vpop.permute.xlu1 %51 }
  0x90   :  { %v57_v20 = vpop.permute.xlu0 %56 }
  0x91   :  { %v175_v30 = vpop.permute.xlu1 %174 }
  0x94   :  { %v170_v33 = vpop.permute.xlu0 %169 }
  0x95   :  { %v270_v39 = vpop.permute.xlu1 %269 }
  0xd8   :  { %v146_v14 = vpop.f32.mrf.mxu0 }
  0xd9   :  { %v147_v25 = vadd.f32 %v146_v14, %v52_v19 }
  0xda   :  { %v396_v16 = vpop.f32.mrf.mxu0 }
  0xdb   :  { %v160_v28 = vmax.f32 %v147_v25, 0.0 }
  0xdc   :  { %v151_v17 = vpop.f32.mrf.mxu0 }
  0xdd   :  { %v152_v22 = vadd.f32 %v151_v17, %v57_v20 }
  0xde   :  { %v399_v18 = vpop.f32.mrf.mxu0 }
  0xdf   :  { %v161_v27 = vmax.f32 %v152_v22, 0.0 }
  0xe0   :  { %v156_v21 = vpop.f32.mrf.mxu0 }
  0xe1   :  { %v157_v23 = vadd.f32 %v156_v21, %v62_v15 }
  0xe2   :  { %v402_v24 = vpop.f32.mrf.mxu0 }
  0xe3   :  { %v162_v26 = vmax.f32 %v157_v23, 0.0 }
  0xe5   :  { %403 = vmatprep.subr.msk.mxu1 %vm184_vm3, %v162_v26 }
  0xe6   :  { %404 = vmatpush3.msk.msra.mxu1 %vm184_vm3, %v162_v26 }
  0xe7   :  { %405 = vmatprep.subr.mxu1 %v161_v27 }
  0xe8   :  { %406 = vmatpush3.msra.mxu1 %v161_v27 }
  0xe9   :  { %407 = vmatprep.subr.mxu1 %v160_v28 }
  0xea   :  { %408 = vmatpush3.msra.mxu1 %v160_v28 }
  0xeb   :  { %410 = vmatmul.mubr.msk.f32.vlgmr.msra.gmra.mxu1 %vm177_vm2, %v164_v29  ;;  %412 = vmatprep.subr.mxu1 %v475_v0 }
  0xec   :  { %416 = vmatprep.mubr.msk.f32.mxu1 %vm476_vm0, %v475_v0 }
 0x1ab   :  { %v411_v31 = vpop.f32.mrf.mxu1 }
 0x1ac   :  { %v260_v32 = vadd.f32 %v411_v31, %v175_v30 }
 0x1ad   :  { %v254_v34 = vpop.f32.mrf.mxu1 }
 0x1ae   :  { %v264_v35 = vmax.f32 %v260_v32, 0.0  ;;  %v255_v36 = vadd.f32 %v254_v34, %v170_v33 }
 0x1b0   :  { %v263_v37 = vmax.f32 %v255_v36, 0.0  ;;  %413 = vmatpush3.msk.msra.mxu1 %vm276_vm4, %v264_v35 }
 0x1b1   :  { %414 = vmatprep.subr.mxu1 %v475_v0 }
 0x1b2   :  { %415 = vmatpush3.msra.mxu1 %v263_v37 }
 0x1b3   :  { %417 = vmatmul.mubr.msk.f32.vlgmr.msra.gmra.mxu1 %vm272_vm5, %v265_v38 }
 0x273   :  { %v346_v40 = vpop.f32.mrf.mxu1 }
 0x274   :  { %v347_v41 = vadd.f32 %v346_v40, %v270_v39 }
 0x275   :  { %v418_v42 = vpop.f32.mrf.mxu1 }
 0x276   :  { %351 = vst.msk [vmem:[#allocation5] sm:$0xf] %vm350_vm6, %v347_v41 }
 0x277   :  { %459 = shalt.err (!%p456_p9)
}
 0x278   :  { %361 = dma.vmem_to_hbm [thread:$0]  %s359_s27, 64, %s587_s7, [#allocation4]  }
 0x279   :  { %470 = dma.done.wait [#allocation4], 64  }
 0x27a   :  { %471 = vsyncadd [#allocation4], 4294967232 }
 0x27b   :  { %365 = vsyncpa [#allocation3], 1 }
 0x27c   :  { %366 = vsyncpa [#allocation4], 1 }

</bundles_post_ra>
